<compile_context>
chip_gen: v7x
topology: tpu7x:2x2x1
jax: 0.10.0
libtpu: 0.0.40
codegen_flags: <defaults>
</compile_context>

<pallas_src>
import functools

import jax
import jax.numpy as jnp
from jax.experimental import pallas as pl
from jax.experimental.pallas import tpu as pltpu

_VMEM_LIMIT_BYTES = 48 * 1024 * 1024  # safe on v7x (64 MiB phys), ample on v5e/v6e


def _pick_batch_tile():
    """Batch rows per grid step, sized per-generation from VMEM capacity."""
    try:
        vmem_bytes = pltpu.get_tpu_info().vmem_capacity_bytes
    except Exception:  # pragma: no cover - conservative fallback
        vmem_bytes = 64 * 2**20
    # 128 MiB VMEM (v5e/v6e): 1024-row tiles get closer to the HBM roofline and
    # amortize the ~0.35us per-grid-step overhead.  64 MiB (v7x): keep 512.
    return 1024 if vmem_bytes >= 100 * 2**20 else 512


_BATCH_TILE = _pick_batch_tile()


def _fused_mlp_kernel(*refs, n_layers):
    """Whole MLP in one kernel body; activations never leave VMEM.

    refs = (x_ref, w0_ref, b0_ref, w1_ref, b1_ref, ..., o_ref)
      x_ref : (TB, d_in)        input dtype (e.g. f32)
      wi_ref: (d_i, d_{i+1})    param dtype (bf16 by default)
      bi_ref: (1, d_{i+1})      f32 (epilogue stays f32, incl. on v5e)
      o_ref : (TB, d_out)       output dtype (= input dtype)
    """
    x_ref = refs[0]
    o_ref = refs[-1]
    h = x_ref[...]
    for i in range(n_layers):                       # static unroll over layers
        w = refs[1 + 2 * i][...]
        b = refs[2 + 2 * i][...]
        # MXU matmul: operands in param dtype, f32 accumulation.
        h = jnp.dot(h.astype(w.dtype), w, preferred_element_type=jnp.float32)
        h = h + b                                   # f32 bias
        if i < n_layers - 1:                        # ReLU between layers only
            h = jnp.maximum(h, 0.0)
    o_ref[...] = h.astype(o_ref.dtype)


def fused_mlp(x, flat_params, out_dim, *, batch_tile=None):
    """Run the fused MLP kernel.

    x:           (B, d_in), any float dtype (cast to param dtype in-kernel).
    flat_params: [w0, b0, w1, b1, ...] with wi (d_i, d_{i+1}), bi (1, d_{i+1}).
    out_dim:     true (unpadded) output feature dim.
    """
    n_layers = len(flat_params) // 2
    kernel = functools.partial(_fused_mlp_kernel, n_layers=n_layers)
    batch, d_in = x.shape
    if batch_tile is None:
        batch_tile = _BATCH_TILE
    out_shape = jax.ShapeDtypeStruct((batch, out_dim), x.dtype)

    # Advisory cost estimate so XLA can overlap surrounding ops with the call.
    flops = 0
    for i in range(n_layers):
        di, do = flat_params[2 * i].shape
        flops += 2 * batch * di * do + batch * do
    bytes_accessed = (
        x.size * x.dtype.itemsize
        + sum(int(p.size) * p.dtype.itemsize for p in flat_params)
        + batch * out_dim * x.dtype.itemsize
    )
    cost = pl.CostEstimate(flops=flops, transcendentals=0,
                           bytes_accessed=bytes_accessed)

    if batch <= batch_tile:
        # Small batch: no grid; full arrays are DMA'd into VMEM once.
        return pl.pallas_call(
            kernel,
            out_shape=out_shape,
            compiler_params=pltpu.CompilerParams(
                vmem_limit_bytes=_VMEM_LIMIT_BYTES),
            cost_estimate=cost,
        )(x, *flat_params)

    # Large batch: tile the batch axis with a cdiv grid (ragged last tile is
    # handled by Pallas edge-block semantics: per-row work, OOB writes dropped).
    grid = (pl.cdiv(batch, batch_tile),)
    # Weights/biases: constant block index (stay resident) + single-buffered
    # (halves their VMEM footprint -- matters most on v7x's 64 MiB).
    param_specs = [
        pl.BlockSpec(p.shape, lambda i: (0, 0), pipeline_mode=pl.Buffered(1))
        for p in flat_params
    ]
    return pl.pallas_call(
        kernel,
        out_shape=out_shape,
        grid=grid,
        in_specs=[pl.BlockSpec((batch_tile, d_in), lambda i: (i, 0),
                               pipeline_mode=pl.Buffered(3))] + param_specs,
        out_specs=pl.BlockSpec((batch_tile, out_dim), lambda i: (i, 0)),
        compiler_params=pltpu.CompilerParams(
            dimension_semantics=("parallel",),   # v7x: shard tiles over 2 TCs
            vmem_limit_bytes=_VMEM_LIMIT_BYTES),
        cost_estimate=cost,
    )(x, *flat_params)


class OTMapPallas:
    """JAX/Pallas port of OTMap realized as an MLP (Linear + ReLU between layers).

    forward(x, reg) -> (bs, out_dim) tensor [and a zero regularization term].
    """

    def __init__(self, inp_dim, hidden_dims, out_dim, key,
                 param_dtype=jnp.bfloat16):
        dims = [inp_dim] + list(hidden_dims) + [out_dim]
        self.inp_dim = inp_dim
        self.out_dim = out_dim

        self.params_f32 = []   # (w_t, b) in f32, used only by the reference
        self.flat_params = []  # [w0, b0, w1, b1, ...] for the kernel
        for d_in, d_out in zip(dims[:-1], dims[1:]):
            key, wk, bk = jax.random.split(key, 3)
            # Mimic torch.nn.Linear's uniform(-1/sqrt(fan_in), 1/sqrt(fan_in)).
            bound = 1.0 / (d_in ** 0.5)
            w = jax.random.uniform(wk, (d_out, d_in), jnp.float32, -bound, bound)
            b = jax.random.uniform(bk, (d_out,), jnp.float32, -bound, bound)
            w_t = w.T                                          # (d_in, d_out)
            self.params_f32.append((w_t, b))
            # Kernel params: bf16 weights (f32 accumulation in-kernel), f32 bias.
            self.flat_params += [w_t.astype(param_dtype),
                                 b.reshape(1, d_out).astype(jnp.float32)]

    def __call__(self, x, reg: bool = False):
        B, d_in = x.shape
        assert d_in == self.inp_dim
        out = fused_mlp(x, self.flat_params, self.out_dim)
        if reg:
            # TODO(synk): OTMap's regularization term is undefined in the spec;
            # deterministic maps contribute zero.
            return out, jnp.array(0.0, dtype=x.dtype)
        return out


def _reference_forward(x, params):
    out = x
    n = len(params)
    for i, (w_t, b) in enumerate(params):
        out = out @ w_t + b
        if i < n - 1:
            out = jnp.maximum(out, 0.0)
    return out


if __name__ == "__main__":
    key = jax.random.PRNGKey(0)
    k_param, k_x1, k_x2 = jax.random.split(key, 3)

    inp_dim = 32
    hidden_dims = [64, 64]
    out_dim = 16

    model = OTMapPallas(inp_dim, hidden_dims, out_dim, k_param)

    # 1) Small batch -> single-shot (no-grid) path.
    x_small = jax.random.normal(k_x1, (8, inp_dim), dtype=jnp.float32)
    out_small, reg = model(x_small, reg=True)
    out_small = jax.block_until_ready(out_small)
    reg = jax.block_until_ready(reg)

    # 2) Larger, non-tile-multiple batch -> batch-tiled grid path (ragged tail,
    #    VMEM-resident single-buffered weights, parallel batch axis).
    big_b = 2 * _BATCH_TILE + 37
    x_big = jax.random.normal(k_x2, (big_b, inp_dim), dtype=jnp.float32)
    out_big = jax.block_until_ready(model(x_big))

    # Sanity check against a plain-JAX f32 reference (bf16 weights in the
    # kernel -> loose tolerance; not a kernel error).
    ref_small = _reference_forward(x_small, model.params_f32)
    ref_big = _reference_forward(x_big, model.params_f32)
    assert out_small.shape == (8, out_dim), out_small.shape
    assert out_big.shape == (big_b, out_dim), out_big.shape
    assert reg.shape == () and float(reg) == 0.0
    assert jnp.allclose(out_small, ref_small, atol=5e-2, rtol=5e-2), \
        "small-batch mismatch vs reference"
    assert jnp.allclose(out_big, ref_big, atol=5e-2, rtol=5e-2), \
        "large-batch mismatch vs reference"

    print("KERNEL_OK")
</pallas_src>

<mosaic_0001>
module attributes {stable_mosaic.version = 11 : i64} {
  func.func @_fused_mlp_kernel(%arg0: memref<8x32xf32, #tpu.memory_space<vmem>>, %arg1: memref<32x64xbf16, #tpu.memory_space<vmem>>, %arg2: memref<1x64xf32, #tpu.memory_space<vmem>>, %arg3: memref<64x64xbf16, #tpu.memory_space<vmem>>, %arg4: memref<1x64xf32, #tpu.memory_space<vmem>>, %arg5: memref<64x16xbf16, #tpu.memory_space<vmem>>, %arg6: memref<1x16xf32, #tpu.memory_space<vmem>>, %arg7: memref<8x16xf32, #tpu.memory_space<vmem>>) attributes {dimension_semantics = [], scalar_prefetch = 0 : i64, scratch_operands = 0 : i64, tpu.core_type = #tpu.core_type<tc>} {
    %c0 = arith.constant 0 : index
    %c0_0 = arith.constant 0 : index
    %0 = vector.load %arg0[%c0, %c0_0] : memref<8x32xf32, #tpu.memory_space<vmem>>, vector<8x32xf32>
    %c0_1 = arith.constant 0 : index
    %c0_2 = arith.constant 0 : index
    %1 = vector.load %arg1[%c0_1, %c0_2] : memref<32x64xbf16, #tpu.memory_space<vmem>>, vector<32x64xbf16>
    %c0_3 = arith.constant 0 : index
    %c0_4 = arith.constant 0 : index
    %2 = vector.load %arg2[%c0_3, %c0_4] : memref<1x64xf32, #tpu.memory_space<vmem>>, vector<1x64xf32>
    %3 = arith.truncf %0 : vector<8x32xf32> to vector<8x32xbf16>
    %cst = arith.constant dense<0.000000e+00> : vector<8x64xf32>
    %4 = tpu.matmul %3, %1, %cst {dimension_numbers = #tpu.dot_dimension_numbers<[1], [0], [0], [1], [0, 0, 1, 1], [], []>} : vector<8x32xbf16>, vector<32x64xbf16>, vector<8x64xf32> -> vector<8x64xf32>
    %5 = vector.broadcast %2 : vector<1x64xf32> to vector<8x64xf32>
    %6 = arith.addf %4, %5 : vector<8x64xf32>
    %cst_5 = arith.constant 0.000000e+00 : f32
    %7 = vector.broadcast %cst_5 : f32 to vector<8x64xf32>
    %8 = arith.maximumf %6, %7 : vector<8x64xf32>
    %c0_6 = arith.constant 0 : index
    %c0_7 = arith.constant 0 : index
    %9 = vector.load %arg3[%c0_6, %c0_7] : memref<64x64xbf16, #tpu.memory_space<vmem>>, vector<64x64xbf16>
    %c0_8 = arith.constant 0 : index
    %c0_9 = arith.constant 0 : index
    %10 = vector.load %arg4[%c0_8, %c0_9] : memref<1x64xf32, #tpu.memory_space<vmem>>, vector<1x64xf32>
    %11 = arith.truncf %8 : vector<8x64xf32> to vector<8x64xbf16>
    %cst_10 = arith.constant dense<0.000000e+00> : vector<8x64xf32>
    %12 = tpu.matmul %11, %9, %cst_10 {dimension_numbers = #tpu.dot_dimension_numbers<[1], [0], [0], [1], [0, 0, 1, 1], [], []>} : vector<8x64xbf16>, vector<64x64xbf16>, vector<8x64xf32> -> vector<8x64xf32>
    %13 = vector.broadcast %10 : vector<1x64xf32> to vector<8x64xf32>
    %14 = arith.addf %12, %13 : vector<8x64xf32>
    %cst_11 = arith.constant 0.000000e+00 : f32
    %15 = vector.broadcast %cst_11 : f32 to vector<8x64xf32>
    %16 = arith.maximumf %14, %15 : vector<8x64xf32>
    %c0_12 = arith.constant 0 : index
    %c0_13 = arith.constant 0 : index
    %17 = vector.load %arg5[%c0_12, %c0_13] : memref<64x16xbf16, #tpu.memory_space<vmem>>, vector<64x16xbf16>
    %c0_14 = arith.constant 0 : index
    %c0_15 = arith.constant 0 : index
    %18 = vector.load %arg6[%c0_14, %c0_15] : memref<1x16xf32, #tpu.memory_space<vmem>>, vector<1x16xf32>
    %19 = arith.truncf %16 : vector<8x64xf32> to vector<8x64xbf16>
    %cst_16 = arith.constant dense<0.000000e+00> : vector<8x16xf32>
    %20 = tpu.matmul %19, %17, %cst_16 {dimension_numbers = #tpu.dot_dimension_numbers<[1], [0], [0], [1], [0, 0, 1, 1], [], []>} : vector<8x64xbf16>, vector<64x16xbf16>, vector<8x16xf32> -> vector<8x16xf32>
    %21 = vector.broadcast %18 : vector<1x16xf32> to vector<8x16xf32>
    %22 = arith.addf %20, %21 : vector<8x16xf32>
    %c0_17 = arith.constant 0 : index
    %c0_18 = arith.constant 0 : index
    %23 = vector.load %arg7[%c0_17, %c0_18] : memref<8x16xf32, #tpu.memory_space<vmem>>, vector<8x16xf32>
    tpu.vector_store %arg7[%c0_17, %c0_18], %22 {strides = array<i32>} : memref<8x16xf32, #tpu.memory_space<vmem>>, vector<8x16xf32>,
    return
  }
}

</mosaic_0001>

<bundles_post_ra>
// kernel: tpu_custom_call.1
= control target key start
LH: loop header
LB: loop body
LE: loop exit
PB: predicated region body
PF: predicated region fallthrough
CT: control target
= control target key end

     0   :  { %12 = vsyncpa [#allocation3], 0  ;;  %s530_s0 = inlined_call_operand.hbm [shape: f32[8,32], index: 0, kind: input, shape index: {}]   ;;  %s531_s1 = inlined_call_operand.vmem [shape: bf16[32,64], index: 1, kind: input, shape index: {}]   ;;  %s532_s2 = inlined_call_operand.vmem [shape: f32[1,64], index: 2, kind: input, shape index: {}]   ;;  %s533_s3 = inlined_call_operand.vmem [shape: bf16[64,64], index: 3, kind: input, shape index: {}]   ;;  %s534_s4 = inlined_call_operand.vmem [shape: f32[1,64], index: 4, kind: input, shape index: {}]   ;;  %s535_s5 = inlined_call_operand.vmem [shape: bf16[64,16], index: 5, kind: input, shape index: {}]   ;;  %s536_s6 = inlined_call_operand.vmem [shape: f32[1,16], index: 6, kind: input, shape index: {}]   ;;  %s537_s7 = inlined_call_operand.hbm [shape: f32[8,16], index: 7, kind: output, shape index: {}]  }
   0x1   :  { %13 = vsyncpa [#allocation4], 0  ;;  %s418_s24 = smov [#allocation2]   ;;  %s370_s28 = scalar_lea.hbm %s530_s0, 128 }
   0x2   :  { %s20_s25 = sshll.u32 %s418_s24, 4  ;;  %p371_p0 = scmp.ne.s32.totalorder %s530_s0, %s370_s28  ;;  %s21_s25 = int_to_ptr.vmem [resolvable:$true] %s20_s25 }
   0x3   :  { %p374_p1 = scmp.lt.u32.totalorder %s370_s28, %s530_s0 }
   0x5   :  { %p376_p2 = pnand %p374_p1, %p371_p0 }
   0x7   :  { %379 = shalt.err (!%p376_p2)
}
   0x8   :  { %s380_s10 = scalar_lea.vmem %s21_s25, 128  ;;  %p385_p4 = scmp.lt.s32.totalorder %s21_s25, %s21_s25 }
   0x9   :  { %p381_p3 = scmp.ne.s32.totalorder %s21_s25, %s380_s10  ;;  %p386_p5 = scmp.lt.s32.totalorder %s380_s10, %s380_s10 }
   0xb   :  { %p387_p6 = por %p386_p5, %p385_p4 }
   0xd   :  { %p388_p7 = pnand %p387_p6, %p381_p3 }
   0xf   :  { %391 = shalt.err (!%p388_p7)
}
  0x10   :  { %23 = dma.hbm_to_vmem [thread:$0]  %s530_s0, 128, %s21_s25, [#allocation3]  }
  0x11   :  { %414 = dma.done.wait [#allocation3], 128  }
  0x12   :  { %415 = vsyncadd [#allocation3], 4294967168  ;;  %v419_v0 = vmov 0.0   ;;  %vm420_vm0 = vmmov 0   ;;  %v360_v1 = vld [vmem:[%s531_s1] sm:$0xff]   ;;  %v361_v2 = vld [vmem:[%s531_s1 + $0x8] sm:$0xff]  }
  0x13   :  { %324 = vmatprep.subr.bf16.mxu0 %v419_v0  ;;  %328 = vmatprep.mubr.msk.bf16.mxu0 %vm420_vm0, %v419_v0  ;;  %v40_v3 = vld [vmem:[#allocation2] sm:$0xff]  ;;  %vm65_vm1 = vcmask 261120   ;;  %v363_v5 = vld [vmem:[%s533_s3 + $0x8] sm:$0xff]   ;;  %v364_v7 = vld [vmem:[%s533_s3 + $0x10] sm:$0xff]   ;;  %vm150_vm2 = vcmask 523264   ;;  %s421_s12 = smov [#allocation5]  }
  0x14   :  { %332 = vmatprep.subr.bf16.mxu1 %v419_v0  ;;  %340 = vmatprep.mubr.msk.bf16.mxu1 %vm420_vm0, %v419_v0  ;;  %v362_v4 = vld [vmem:[%s533_s3] sm:$0xff]   ;;  %v46_v6 = vpack.c.bf16 %v40_v3, %v40_v3  ;;  %v365_v8 = vld [vmem:[%s533_s3 + $0x18] sm:$0xff]   ;;  %v367_v10 = vld [vmem:[%s535_s5 + $0x8] sm:$0xff]   ;;  %vm278_vm3 = vcmask 130048  }
  0x15   :  { %325 = vmatpush3.bf16.msra.mxu0 %v360_v1  ;;  %333 = vmatpush3.bf16.msra.mxu1 %v362_v4  ;;  %v366_v9 = vld [vmem:[%s535_s5] sm:$0xff]   ;;  %v368_v19 = vld [vmem:[%s535_s5 + $0x10] sm:$0xff]   ;;  %v369_v20 = vld [vmem:[%s535_s5 + $0x18] sm:$0xff]   ;;  %s286_s5 = sshll.u32 %s421_s12, 4  ;;  %s287_s5 = int_to_ptr.vmem [resolvable:$true] %s286_s5 }
  0x16   :  { %326 = vmatprep.subr.bf16.mxu0 %v419_v0  ;;  %334 = vmatprep.subr.bf16.mxu1 %v419_v0  ;;  %v295_v11 = vld [vmem:[%s532_s2] ss:$0 sm:$0xff]  ;;  %p397_p9 = scmp.lt.s32.totalorder %s287_s5, %s287_s5 }
  0x17   :  { %v299_v21 = vld [vmem:[%s534_s4] ss:$0 sm:$0xff]  ;;  %s392_s4 = scalar_lea.vmem %s287_s5, 128 }
  0x18   :  { %v305_v29 = vld [vmem:[%s536_s6] ss:$0 sm:$0xff]  ;;  %p393_p8 = scmp.ne.s32.totalorder %s287_s5, %s392_s4  ;;  %p398_p10 = scmp.lt.s32.totalorder %s392_s4, %s392_s4 }
  0x19   :  { %327 = vmatpush3.bf16.msra.mxu0 %v361_v2  ;;  %335 = vmatpush3.bf16.msra.mxu1 %v363_v5 }
  0x1a   :  { %344 = vmatprep.subr.bf16.mxu0 %v419_v0  ;;  %336 = vmatprep.subr.bf16.mxu1 %v419_v0  ;;  %p399_p11 = por %p398_p10, %p397_p9 }
  0x1c   :  { %329 = vmatmul.mubr.msk.bf16.vlgmr.msra.gmra.mrb[0].mxu0 %vm65_vm1, %v46_v6  ;;  %p400_p12 = pnand %p399_p11, %p393_p8 }
  0x1d   :  { %352 = vmatprep.mubr.msk.bf16.mxu0 %vm420_vm0, %v419_v0  ;;  %337 = vmatpush3.bf16.msra.mxu1 %v364_v7 }
  0x1e   :  { %338 = vmatprep.subr.bf16.mxu1 %v419_v0  ;;  %345 = vmatpush3.bf16.msra.mxu0 %v366_v9 }
  0x1f   :  { %346 = vmatprep.subr.bf16.mxu0 %v419_v0 }
  0x21   :  { %339 = vmatpush3.bf16.msra.mxu1 %v365_v8 }
  0x22   :  { %347 = vmatpush3.bf16.msra.mxu0 %v367_v10 }
  0x23   :  { %348 = vmatprep.subr.bf16.mxu0 %v419_v0 }
  0x26   :  { %349 = vmatpush3.bf16.msra.mxu0 %v368_v19 }
  0x27   :  { %350 = vmatprep.subr.bf16.mxu0 %v419_v0 }
  0x2a   :  { %351 = vmatpush3.bf16.msra.mxu0 %v369_v20 }
  0xef   :  { %v103_v12 = vpop.f32.mrb[0].mxu0 }
  0xf0   :  { %v104_v13 = vadd.f32 %v295_v11, %v103_v12  ;;  %v330_v14 = vpop.f32.mrb[1].mxu0 }
  0xf1   :  { %v106_v15 = vpop.f32.mrb[2].mxu0 }
  0xf2   :  { %v109_v16 = vmax.f32 %v104_v13, 0.0  ;;  %v331_v17 = vpop.f32.mrb[3].mxu0 }
  0xf4   :  { %v119_v18 = vpack.c.bf16 %v109_v16, %v109_v16 }
  0xf6   :  { %341 = vmatmul.mubr.msk.bf16.vlgmr.msra.gmra.mrb[0].mxu1 %vm150_vm2, %v119_v18 }
 0x1c9   :  { %v188_v22 = vpop.f32.mrb[0].mxu1 }
 0x1ca   :  { %v189_v23 = vadd.f32 %v299_v21, %v188_v22  ;;  %v342_v24 = vpop.f32.mrb[1].mxu1 }
 0x1cb   :  { %v191_v25 = vpop.f32.mrb[2].mxu1 }
 0x1cc   :  { %v194_v26 = vmax.f32 %v189_v23, 0.0  ;;  %v343_v27 = vpop.f32.mrb[3].mxu1 }
 0x1ce   :  { %v204_v28 = vpack.c.bf16 %v194_v26, %v194_v26 }
 0x1d0   :  { %353 = vmatmul.mubr.msk.bf16.vlgmr.msra.gmra.mrb[4].mxu0 %vm150_vm2, %v204_v28 }
 0x2a3   :  { %v272_v30 = vpop.f32.mrb[4].mxu0 }
 0x2a4   :  { %v273_v31 = vadd.f32 %v305_v29, %v272_v30  ;;  %v354_v32 = vpop.f32.mrb[5].mxu0 }
 0x2a5   :  { %v275_v33 = vpop.f32.mrb[6].mxu0 }
 0x2a6   :  { %v355_v34 = vpop.f32.mrb[7].mxu0  ;;  %279 = vst.msk [vmem:[#allocation5] sm:$0xff] %vm278_vm3, %v273_v31 }
 0x2a7   :  { %403 = shalt.err (!%p400_p12)
}
 0x2a8   :  { %s404_s6 = scalar_lea.hbm %s537_s7, 128 }
 0x2a9   :  { %p405_p13 = scmp.ne.s32.totalorder %s537_s7, %s404_s6  ;;  %p408_p0 = scmp.lt.u32.totalorder %s404_s6, %s537_s7 }
 0x2ab   :  { %p410_p1 = pnand %p408_p0, %p405_p13 }
 0x2ad   :  { %413 = shalt.err (!%p410_p1)
}
 0x2ae   :  { %289 = dma.vmem_to_hbm [thread:$0]  %s287_s5, 128, %s537_s7, [#allocation4]  }
 0x2af   :  { %416 = dma.done.wait [#allocation4], 128  }
 0x2b0   :  { %417 = vsyncadd [#allocation4], 4294967168 }
 0x2b1   :  { %293 = vsyncpa [#allocation3], 1 }
 0x2b2   :  { %294 = vsyncpa [#allocation4], 1 }

</bundles_post_ra>
